<compile_context>
chip_gen: v6e
topology: v6e:2x2x1
jax: 0.10.0
libtpu: 0.0.40
codegen_flags: <defaults>
</compile_context>

<pallas_src>
import functools

import jax
import jax.numpy as jnp
from jax.experimental import pallas as pl
from jax.experimental.pallas import tpu as pltpu


NEG_INF = -1e30


def _elu(x):
    # ELU (alpha=1): where(x > 0, x, exp(x) - 1). exp sits on the EUP slot.
    return jnp.where(x > 0, x, jnp.exp(jnp.minimum(x, 0.0)) - 1.0)


def _vmem_capacity_bytes():
    try:
        return int(pltpu.get_tpu_info().vmem_capacity_bytes)
    except Exception:
        return 64 << 20  # conservative default (v7x per-TensorCore VMEM)


# ---------------------------------------------------------------------------
# Stage 1: fused projection + attention-logit matmul (hoisted, O(1) per layer)
# ---------------------------------------------------------------------------
def gat_project_kernel(h_ref, w_ref, a_ref, ft_ref, logit_ref):
    """ft = h @ W_all ; logits = ft @ blockdiag[attn_l | attn_r].

    h_ref:     (Tm, Fin)   f32
    w_ref:     (Fin, H*D)  f32
    a_ref:     (H*D, 2H)   f32
    ft_ref:    (Tm, H*D)   bf16
    logit_ref: (Tm, 2H)    f32  cols [0,H)=a1 (src role), [H,2H)=a2 (dst role)
    """
    ft = jnp.dot(h_ref[...].astype(jnp.bfloat16),
                 w_ref[...].astype(jnp.bfloat16),
                 preferred_element_type=jnp.float32)          # (Tm, H*D) f32
    ft_bf = ft.astype(jnp.bfloat16)
    ft_ref[...] = ft_bf
    logit_ref[...] = jnp.dot(ft_bf, a_ref[...].astype(jnp.bfloat16),
                             preferred_element_type=jnp.float32)


def gat_project(h, W_all, A_logit, *, vmem_limit):
    N, Fin = h.shape
    HD = W_all.shape[1]
    two_h = A_logit.shape[1]

    # bf16 output blocks pack 16 rows per sublane tile: tile_m must be a
    # multiple of 16 (or the full node count).
    cands = [t for t in range(16, min(N, 512) + 1, 16) if N % t == 0]
    tile_m = max(cands) if cands else N
    grid = (N // tile_m,)

    return pl.pallas_call(
        gat_project_kernel,
        out_shape=(jax.ShapeDtypeStruct((N, HD), jnp.bfloat16),
                   jax.ShapeDtypeStruct((N, two_h), jnp.float32)),
        grid=grid,
        in_specs=[
            pl.BlockSpec((tile_m, Fin), lambda i: (i, 0)),
            pl.BlockSpec((Fin, HD), lambda i: (0, 0)),
            pl.BlockSpec((HD, two_h), lambda i: (0, 0)),
        ],
        out_specs=(
            pl.BlockSpec((tile_m, HD), lambda i: (i, 0)),
            pl.BlockSpec((tile_m, two_h), lambda i: (i, 0)),
        ),
        compiler_params=pltpu.CompilerParams(
            dimension_semantics=("parallel",),
            vmem_limit_bytes=vmem_limit),
    )(h, W_all, A_logit)


# ---------------------------------------------------------------------------
# Stage 2: masked edge-softmax + aggregation, tiled over destination rows
# ---------------------------------------------------------------------------
def gat_attn_kernel(ft_ref, asrc_ref, adst_ref, bias_ref, out_ref, *,
                    alpha, num_heads, head_dim, apply_elu, mean_heads):
    """One destination-row tile, all heads.

    ft_ref:   (N, H*D)  bf16  projected features of ALL source nodes
    asrc_ref: (H, N)    f32   source logits a1, pre-transposed (lane = node)
    adst_ref: (Tn, H)   f32   destination logits a2 for this tile
    bias_ref: (Tn, N)   f32   additive mask: 0 where edge src->dst exists, -1e30 else
    out_ref:  (Tn, H*D) f32   (or (Tn, D) if mean_heads) — one lane-dense store
    """
    ft_bf = ft_ref[...]
    asrc = asrc_ref[...]
    adst = adst_ref[...]
    bias = bias_ref[...]
    has_edge = bias > jnp.float32(-1.0)      # computed once, reused by every head

    outs = []
    for head in range(num_heads):            # H is tiny & static -> unrolled
        lo = head * head_dim
        # Transposed edge logits: e[j, i] = leaky_relu(a1[src=i] + a2[dst=j]).
        e = adst[:, head:head + 1] + asrc[head:head + 1, :]          # (Tn, N)
        e = jnp.maximum(e, alpha * e) + bias                          # LeakyReLU + mask

        # Masked edge-softmax over incoming edges (lane-axis reduce).
        m = jnp.max(e, axis=-1, keepdims=True)                        # (Tn, 1)
        p = jnp.exp(e - m)
        # Keep this mask: it is what makes zero-in-degree rows output exactly 0.
        p = jnp.where(has_edge, p, jnp.float32(0.0))
        denom = jnp.sum(p, axis=-1, keepdims=True)
        inv = pl.reciprocal(jnp.maximum(denom, jnp.float32(1e-30)), approx=True)
        attn = (p * inv).astype(jnp.bfloat16)                         # (Tn, N)

        # Aggregation: out[j] = sum_i attn[j, i] * ft[i]  (MXU, f32 accumulation).
        outs.append(jnp.dot(attn, ft_bf[:, lo:lo + head_dim],
                            preferred_element_type=jnp.float32))      # (Tn, D)

    if mean_heads:
        val = outs[0]
        for o in outs[1:]:
            val = val + o
        val = val * jnp.float32(1.0 / num_heads)
    else:
        val = jnp.concatenate(outs, axis=-1) if num_heads > 1 else outs[0]
    if apply_elu:
        val = _elu(val)
    out_ref[...] = val.astype(out_ref.dtype)   # single lane-dense store per tile


def _pick_tile_n(N, HD, H, out_cols, budget_bytes):
    """Largest destination tile (multiple of 8, dividing N) fitting the VMEM
    budget, preferring >= 2 tiles so both TensorCores get work on v7x."""
    cands = [t for t in range(8, N + 1, 8) if N % t == 0]
    if not cands:
        return N
    pref = [t for t in cands if N // t >= 2] or cands

    def working_set(t):
        const = 2 * (N * HD * 2 + H * N * 4)                    # double-buffered ft + a1^T
        tiled = 2 * (t * N * 4 + t * H * 4 + t * out_cols * 4)  # bias, a2, out tiles
        temps = t * N * (4 + 4 + 2)                             # e, p, bf16 attn
        return const + tiled + temps

    for t in sorted(pref, reverse=True):
        if working_set(t) <= budget_bytes:
            return t
    return min(cands)


def gat_layer(h, W_all, attn_l, attn_r, adj_bias_t, alpha, *,
              num_heads, head_dim, apply_elu, mean_heads):
    """One GAT layer, all heads fused.

    h: (N, Fin) f32; W_all: (Fin, H*D); attn_l/attn_r: (H, D);
    adj_bias_t: (N, N) f32 additive mask, rows = dst, cols = src.
    Returns (N, H*D) f32 (or (N, D) if mean_heads).
    """
    N, Fin = h.shape
    HD = num_heads * head_dim
    assert W_all.shape == (Fin, HD)
    out_cols = head_dim if mean_heads else HD

    vmem_cap = _vmem_capacity_bytes()
    vmem_limit = int(min(vmem_cap, 128 << 20) * 3 // 4)

    # Block-diagonal [attn_l | attn_r] so per-node logits are one MXU matmul.
    A_logit = jnp.zeros((HD, 2 * num_heads), dtype=jnp.float32)
    for hh in range(num_heads):
        A_logit = A_logit.at[hh * head_dim:(hh + 1) * head_dim, hh].set(attn_l[hh])
        A_logit = A_logit.at[hh * head_dim:(hh + 1) * head_dim,
                             num_heads + hh].set(attn_r[hh])

    # Stage 1 (hoisted, runs once per layer): projection + per-node logits.
    ft_bf, logits = gat_project(h, W_all, A_logit, vmem_limit=vmem_limit)
    a_src_t = jnp.transpose(logits[:, :num_heads])   # (H, N), lane = node
    a_dst = logits[:, num_heads:]                    # (N, H)

    # Stage 2: destination-tiled attention.
    tile_n = _pick_tile_n(N, HD, num_heads, out_cols, int(vmem_limit * 0.6))
    grid = (N // tile_n,)

    kernel = functools.partial(
        gat_attn_kernel, alpha=alpha, num_heads=num_heads, head_dim=head_dim,
        apply_elu=apply_elu, mean_heads=mean_heads)

    # NOTE: ft / a_src_t have constant index maps (grid-invariant); they could
    # be single-buffered via pipeline_mode once that is needed for VMEM headroom.
    return pl.pallas_call(
        kernel,
        out_shape=jax.ShapeDtypeStruct((N, out_cols), jnp.float32),
        grid=grid,
        in_specs=[
            pl.BlockSpec((N, HD), lambda j: (0, 0)),               # ft (all sources) bf16
            pl.BlockSpec((num_heads, N), lambda j: (0, 0)),        # a1^T (all sources)
            pl.BlockSpec((tile_n, num_heads), lambda j: (j, 0)),   # a2 for this dst tile
            pl.BlockSpec((tile_n, N), lambda j: (j, 0)),           # mask-bias tile
        ],
        out_specs=pl.BlockSpec((tile_n, out_cols), lambda j: (j, 0)),
        compiler_params=pltpu.CompilerParams(
            dimension_semantics=("parallel",),
            vmem_limit_bytes=vmem_limit),
    )(ft_bf, a_src_t, a_dst, adj_bias_t)


# ---------------------------------------------------------------------------
# Parameters & multi-layer forward (matches the PyTorch GAT layer dims)
# ---------------------------------------------------------------------------
def xavier_normal(key, shape, fan_in, fan_out, gain=1.414):
    std = gain * (2.0 / (fan_in + fan_out)) ** 0.5
    return std * jax.random.normal(key, shape, dtype=jnp.float32)


def init_gat_params(key, num_layers, in_dim, num_hidden, num_classes, heads):
    """fc weights fused as (Fin, H*D); attn vectors as (H, D)."""
    dims_in = [in_dim] + [num_hidden * heads[l] for l in range(num_layers)]
    dims_out = [num_hidden] * num_layers + [num_classes]
    layers = []
    for l in range(num_layers + 1):
        fin, dout, h = dims_in[l], dims_out[l], heads[l]
        key, k_w, k_l, k_r = jax.random.split(key, 4)
        W = xavier_normal(k_w, (fin, h * dout), fan_in=fin, fan_out=h * dout)
        al = xavier_normal(k_l, (h, dout), fan_in=h * dout, fan_out=dout)
        ar = xavier_normal(k_r, (h, dout), fan_in=h * dout, fan_out=dout)
        layers.append({"W": W, "al": al, "ar": ar})
    return layers


def gat_forward(layers, adj, x, alpha, num_layers, heads, num_hidden, num_classes):
    # Additive attention mask (rows = dst, cols = src) built ONCE, shared by all layers.
    adj_bias_t = jnp.where(jnp.transpose(adj) > 0,
                           jnp.float32(0.0), jnp.float32(NEG_INF))
    h = x
    for l in range(num_layers):
        p = layers[l]
        # ELU + head-concat fused into the kernel epilogue; output is (N, H*D).
        h = gat_layer(h, p["W"], p["al"], p["ar"], adj_bias_t, alpha,
                      num_heads=heads[l], head_dim=num_hidden,
                      apply_elu=True, mean_heads=False)
    p = layers[-1]
    # Final layer: mean over heads fused in-kernel, no activation.
    logits = gat_layer(h, p["W"], p["al"], p["ar"], adj_bias_t, alpha,
                       num_heads=heads[-1], head_dim=num_classes,
                       apply_elu=False, mean_heads=True)
    return logits


if __name__ == "__main__":
    key = jax.random.PRNGKey(0)

    # Small config consistent with the module
    num_layers = 2
    in_dim = 16
    num_hidden = 8
    num_classes = 8
    heads = [2, 2, 1]          # len == num_layers + 1
    alpha = 0.2                # LeakyReLU slope
    N = 16                     # number of graph nodes

    key, k_x, k_adj, k_p = jax.random.split(key, 4)

    # Node features
    x = jax.random.normal(k_x, (N, in_dim), dtype=jnp.float32)

    # Random directed adjacency with self-loops (every node has >= 1 in-edge;
    # the kernel also guards the zero-in-degree case explicitly).
    rand = jax.random.uniform(k_adj, (N, N))
    adj = jnp.where(rand < 0.3, 1.0, 0.0).astype(jnp.float32)
    adj = jnp.maximum(adj, jnp.eye(N, dtype=jnp.float32))

    # Parameters
    layers = init_gat_params(k_p, num_layers, in_dim, num_hidden, num_classes, heads)

    logits = gat_forward(layers, adj, x, alpha, num_layers, heads,
                         num_hidden, num_classes)
    jax.block_until_ready(logits)

    assert logits.shape == (N, num_classes)
    assert bool(jnp.all(jnp.isfinite(logits)))
    print("KERNEL_OK")
</pallas_src>

<mosaic_0001>
module attributes {stable_mosaic.version = 11 : i64} {
  func.func @gat_project_kernel(%arg0: i32, %arg1: memref<16x16xf32, #tpu.memory_space<vmem>>, %arg2: memref<16x16xf32, #tpu.memory_space<vmem>>, %arg3: memref<16x4xf32, #tpu.memory_space<vmem>>, %arg4: memref<16x16xbf16, #tpu.memory_space<vmem>>, %arg5: memref<16x4xf32, #tpu.memory_space<vmem>>) attributes {dimension_semantics = [#tpu.dimension_semantics<parallel>], iteration_bounds = array<i64: 1>, scalar_prefetch = 0 : i64, scratch_operands = 0 : i64, tpu.core_type = #tpu.core_type<tc>, window_params = [{transform_indices = @transform_0, window_bounds = array<i64: 16, 16>}, {pipeline_mode = #tpu.pipeline_mode<synchronous>, transform_indices = @transform_1, window_bounds = array<i64: 16, 16>}, {pipeline_mode = #tpu.pipeline_mode<synchronous>, transform_indices = @transform_2, window_bounds = array<i64: 16, 4>}, {transform_indices = @transform_3, window_bounds = array<i64: 16, 16>}, {transform_indices = @transform_4, window_bounds = array<i64: 16, 4>}]} {
    %c0 = arith.constant 0 : index
    %c0_0 = arith.constant 0 : index
    %0 = vector.load %arg1[%c0, %c0_0] : memref<16x16xf32, #tpu.memory_space<vmem>>, vector<16x16xf32>
    %1 = arith.truncf %0 : vector<16x16xf32> to vector<16x16xbf16>
    %c0_1 = arith.constant 0 : index
    %c0_2 = arith.constant 0 : index
    %2 = vector.load %arg2[%c0_1, %c0_2] : memref<16x16xf32, #tpu.memory_space<vmem>>, vector<16x16xf32>
    %3 = arith.truncf %2 : vector<16x16xf32> to vector<16x16xbf16>
    %cst = arith.constant dense<0.000000e+00> : vector<16x16xf32>
    %4 = tpu.matmul %1, %3, %cst {dimension_numbers = #tpu.dot_dimension_numbers<[1], [0], [0], [1], [0, 0, 1, 1], [], []>} : vector<16x16xbf16>, vector<16x16xbf16>, vector<16x16xf32> -> vector<16x16xf32>
    %5 = arith.truncf %4 : vector<16x16xf32> to vector<16x16xbf16>
    %c0_3 = arith.constant 0 : index
    %c0_4 = arith.constant 0 : index
    %6 = vector.load %arg4[%c0_3, %c0_4] : memref<16x16xbf16, #tpu.memory_space<vmem>>, vector<16x16xbf16>
    tpu.vector_store %arg4[%c0_3, %c0_4], %5 {strides = array<i32>} : memref<16x16xbf16, #tpu.memory_space<vmem>>, vector<16x16xbf16>,
    %c0_5 = arith.constant 0 : index
    %c0_6 = arith.constant 0 : index
    %7 = vector.load %arg3[%c0_5, %c0_6] : memref<16x4xf32, #tpu.memory_space<vmem>>, vector<16x4xf32>
    %8 = arith.truncf %7 : vector<16x4xf32> to vector<16x4xbf16>
    %cst_7 = arith.constant dense<0.000000e+00> : vector<16x4xf32>
    %9 = tpu.matmul %5, %8, %cst_7 {dimension_numbers = #tpu.dot_dimension_numbers<[1], [0], [0], [1], [0, 0, 1, 1], [], []>} : vector<16x16xbf16>, vector<16x4xbf16>, vector<16x4xf32> -> vector<16x4xf32>
    %c0_8 = arith.constant 0 : index
    %c0_9 = arith.constant 0 : index
    %10 = vector.load %arg5[%c0_8, %c0_9] : memref<16x4xf32, #tpu.memory_space<vmem>>, vector<16x4xf32>
    tpu.vector_store %arg5[%c0_8, %c0_9], %9 {strides = array<i32>} : memref<16x4xf32, #tpu.memory_space<vmem>>, vector<16x4xf32>,
    return
  }
  func.func @transform_0(%arg0: i32) -> (i32, i32) {
    %c0_i32 = arith.constant 0 : i32
    %c0_i32_0 = arith.constant 0 : i32
    return %arg0, %c0_i32 : i32, i32
  }
  func.func @transform_1(%arg0: i32) -> (i32, i32) {
    %c0_i32 = arith.constant 0 : i32
    %c0_i32_0 = arith.constant 0 : i32
    %c0_i32_1 = arith.constant 0 : i32
    return %c0_i32, %c0_i32_0 : i32, i32
  }
  func.func @transform_2(%arg0: i32) -> (i32, i32) {
    %c0_i32 = arith.constant 0 : i32
    %c0_i32_0 = arith.constant 0 : i32
    %c0_i32_1 = arith.constant 0 : i32
    return %c0_i32, %c0_i32_0 : i32, i32
  }
  func.func @transform_3(%arg0: i32) -> (i32, i32) {
    %c0_i32 = arith.constant 0 : i32
    %c0_i32_0 = arith.constant 0 : i32
    return %arg0, %c0_i32 : i32, i32
  }
  func.func @transform_4(%arg0: i32) -> (i32, i32) {
    %c0_i32 = arith.constant 0 : i32
    %c0_i32_0 = arith.constant 0 : i32
    return %arg0, %c0_i32 : i32, i32
  }
}

</mosaic_0001>

<bundles_post_ra>
// kernel: tpu_custom_call.1
= control target key start
LH: loop header
LB: loop body
LE: loop exit
PB: predicated region body
PF: predicated region fallthrough
CT: control target
= control target key end

     0   :  { %10 = vsyncpa [#allocation3], 0  ;;  %s298_s0 = inlined_call_operand.vmem [shape: f32[16,16], index: 0, kind: input, shape index: {}]   ;;  %s299_s1 = inlined_call_operand.hbm [shape: f32[16,16], index: 1, kind: input, shape index: {}]   ;;  %s300_s2 = inlined_call_operand.vmem [shape: f32[16,4], index: 2, kind: input, shape index: {}]   ;;  %s301_s3 = inlined_call_operand.hbm [shape: bf16[16,16], index: 3, kind: output, shape index: {0}]   ;;  %s302_s4 = inlined_call_operand.vmem [shape: f32[16,4], index: 4, kind: output, shape index: {1}]  }
   0x1   :  { %11 = vsyncpa [#allocation4], 0  ;;  %s239_s15 = smov [#allocation2]  }
   0x2   :  { %s19_s16 = sshll.u32 %s239_s15, 4  ;;  %s20_s16 = int_to_ptr.vmem [resolvable:$true] %s19_s16 }
   0x3   :  { %s203_s17 = scalar_lea.vmem %s20_s16, 256  ;;  %p208_p1 = scmp.lt.s32.totalorder %s20_s16, %s20_s16 }
   0x4   :  { %p204_p0 = scmp.ne.s32.totalorder %s20_s16, %s203_s17  ;;  %p209_p2 = scmp.lt.s32.totalorder %s203_s17, %s203_s17 }
   0x6   :  { %p210_p3 = por %p209_p2, %p208_p1 }
   0x8   :  { %p211_p4 = pnand %p210_p3, %p204_p0 }
   0xa   :  { %214 = shalt.err (!%p211_p4)
}
   0xb   :  { %s240_s18 = smov 128   ;;  %s241_s19 = smov 8  }
   0xc   :  { %25 = dma.hbm_to_vmem [thread:$0]  %s299_s1, 256, %s20_s16, [#allocation3], %s240_s18, %s240_s18, %s241_s19  }
   0xd   :  { %235 = dma.done.wait [#allocation3], 256  }
   0xe   :  { %236 = vsyncadd [#allocation3], 4294967040  ;;  %v242_v0 = vmov 0.0   ;;  %vm243_vm0 = vmmov 0   ;;  %v35_v1 = vld [vmem:[#allocation2] sm:$0xff]  ;;  %v36_v2 = vld [vmem:[#allocation2 + $0x8] sm:$0xff] }
   0xf   :  { %175 = vmatprep.subr.bf16.mxu0 %v242_v0  ;;  %177 = vmatprep.mubr.msk.bf16.mxu0 %vm243_vm0, %v242_v0  ;;  %v32_v3 = vld [vmem:[%s298_s0] sm:$0xff]  ;;  %v37_v4 = vpack.c.bf16 %v36_v2, %v35_v1  ;;  %v33_v5 = vld [vmem:[%s298_s0 + $0x8] sm:$0xff]  ;;  %vm38_vm1 = vcmask 130048   ;;  %vm91_vm2 = vcmask 125952   ;;  %s244_s0 = smov [#allocation5]  }
  0x10   :  { %181 = vmatprep.subr.bf16.mxu1 %v242_v0  ;;  %183 = vmatprep.mubr.msk.bf16.mxu1 %vm243_vm0, %v242_v0  ;;  %v34_v6 = vpack.c.bf16 %v33_v5, %v32_v3  ;;  %v94_v7 = vld [vmem:[%s300_s2] sm:$0xff]  ;;  %v95_v8 = vld [vmem:[%s300_s2 + $0x8] sm:$0xff]  ;;  %s149_s29 = sshll.u32 %s244_s0, 4  ;;  %s150_s29 = int_to_ptr.vmem [resolvable:$true] %s149_s29 }
  0x11   :  { %176 = vmatpush3.bf16.msra.mxu0 %v37_v4  ;;  %v96_v9 = vpack.c.bf16 %v95_v8, %v94_v7  ;;  %s215_s30 = scalar_lea.vmem %s150_s29, 128  ;;  %p220_p6 = scmp.lt.s32.totalorder %s150_s29, %s150_s29 }
  0x12   :  { %p216_p5 = scmp.ne.s32.totalorder %s150_s29, %s215_s30  ;;  %p221_p7 = scmp.lt.s32.totalorder %s215_s30, %s215_s30 }
  0x13   :  { %182 = vmatpush3.bf16.msra.mxu1 %v96_v9 }
  0x14   :  { %178 = vmatmul.mubr.msk.bf16.vlgmr.msra.gmra.mxu0 %vm38_vm1, %v34_v6  ;;  %p222_p8 = por %p221_p7, %p220_p6 }
  0x16   :  { %p223_p9 = pnand %p222_p8, %p216_p5 }
  0xd4   :  { %v76_v10 = vpop.f32.mrf.mxu0 }
  0xd5   :  { %v169_v11 = vpack.c.bf16 %v76_v10, %v76_v10 }
  0xd6   :  { %v179_v12 = vpop.f32.mrf.mxu0 }
  0xd7   :  { %92 = vst.msk [vmem:[#allocation5] sm:$0xf] %vm91_vm2, %v169_v11 }
  0xd8   :  { %v79_v13 = vpop.f32.mrf.mxu0 }
  0xd9   :  { %v83_v14 = vpack.c.bf16 %v79_v13, %v76_v10  ;;  %v170_v15 = vpack.c.bf16 %v79_v13, %v79_v13 }
  0xda   :  { %v180_v16 = vpop.f32.mrf.mxu0 }
  0xdb   :  { %93 = vst.msk [vmem:[#allocation5 + $0x4] sm:$0xf] %vm91_vm2, %v170_v15  ;;  %184 = vmatmul.mubr.msk.bf16.vlgmr.msra.gmra.mxu1 %vm38_vm1, %v83_v14 }
  0xdc   :  { %226 = shalt.err (!%p223_p9)
}
  0xdd   :  { %s245_s2 = smov 64   ;;  %s246_s5 = smov 4   ;;  %vm141_vm3 = vcmask 31744  }
  0xde   :  { %155 = dma.vmem_to_hbm [thread:$0]  %s150_s29, 128, %s301_s3, [#allocation4], %s245_s2, %s245_s2, %s246_s5  }
 0x19b   :  { %v134_v17 = vpop.f32.mrf.mxu1 }
 0x19c   :  { %142 = vst.msk [vmem:[%s302_s4] sm:$0xff] %vm141_vm3, %v134_v17 }
 0x19d   :  { %v185_v18 = vpop.f32.mrf.mxu1 }
 0x19f   :  { %v137_v19 = vpop.f32.mrf.mxu1 }
 0x1a0   :  { %143 = vst.msk [vmem:[%s302_s4 + $0x8] sm:$0xff] %vm141_vm3, %v137_v19 }
 0x1a1   :  { %v186_v20 = vpop.f32.mrf.mxu1 }
 0x1a2   :  { %237 = dma.done.wait [#allocation4], 128  }
 0x1a3   :  { %238 = vsyncadd [#allocation4], 4294967168 }
 0x1a4   :  { %163 = vsyncpa [#allocation3], 1 }
 0x1a5   :  { %164 = vsyncpa [#allocation4], 1 }

</bundles_post_ra>
